<compile_context>
chip_gen: v7x
topology: tpu7x:2x2x1
jax: 0.10.0
libtpu: 0.0.40
codegen_flags: <defaults>
</compile_context>

<pallas_src>
import numpy as np

import jax
import jax.numpy as jnp
from jax import lax
from jax.experimental import pallas as pl
from jax.experimental.pallas import tpu as pltpu


# ---------------------------------------------------------------------------
# "config/DT/model.yaml" stand-in (small synthetic sizes)
# ---------------------------------------------------------------------------
MODEL_CONFIG = dict(
    n_mel_channels=16,
    ref_enc_filters=[4, 8, 16],   # 3 conv layers, each stride 2, 3x3, pad 1
    E=32,                         # GST embedding dim (GRU hidden = E // 2)
    token_num=8,
    num_heads=4,
)

_VMEM_SPEC = pl.BlockSpec(memory_space=pltpu.MemorySpace.VMEM)


# ---------------------------------------------------------------------------
# Host-side lowering: stride-2 3x3 conv -> Toeplitz matmul matrix
# ---------------------------------------------------------------------------
def _conv_toeplitz(w_conv, h_in, w_in, *, stride=2, pad=1, time_major_cols=False):
    """w_conv: np [Cout, Cin, 3, 3].  Returns (mat [Cin*H*W, n_cols], col_channel,
    Ho, Wo).  Columns are ordered (c, oh, ow) (NCHW flatten) or, for the last
    layer, (oh, c, ow) so a timestep's GRU features are contiguous."""
    cout, cin, kh_, kw_ = w_conv.shape
    ho = (h_in + 2 * pad - kh_) // stride + 1
    wo = (w_in + 2 * pad - kw_) // stride + 1
    mat = np.zeros((cin * h_in * w_in, cout * ho * wo), np.float32)
    col_channel = np.zeros((cout * ho * wo,), np.int64)
    for co in range(cout):
        for oh in range(ho):
            for ow in range(wo):
                if time_major_cols:
                    col = (oh * cout + co) * wo + ow
                else:
                    col = (co * ho + oh) * wo + ow
                col_channel[col] = co
                for ci in range(cin):
                    for kh in range(kh_):
                        for kw in range(kw_):
                            ih = oh * stride + kh - pad
                            iw = ow * stride + kw - pad
                            if 0 <= ih < h_in and 0 <= iw < w_in:
                                row = (ci * h_in + ih) * w_in + iw
                                mat[row, col] = w_conv[co, ci, kh, kw]
    return mat, col_channel, ho, wo


# ---------------------------------------------------------------------------
# Fused GST forward kernel: conv stack + GRU + style-token attention
# ---------------------------------------------------------------------------
def _make_gst_kernel(n_conv_layers):
    def kernel(*refs):
        f32 = jnp.float32
        bf16 = jnp.bfloat16
        x_ref = refs[0]
        conv_refs = refs[1:1 + 3 * n_conv_layers]
        (wih_ref, bih_ref, whh_ref, bhh_ref,
         tok_ref, wq_ref, wk_ref, wv_ref,
         o_ref, xslab_ref) = refs[1 + 3 * n_conv_layers:]

        n = x_ref.shape[0]

        # --- Reference encoder: conv(s2,3x3,p1) + eval-BN + ReLU, as matmuls ---
        # bf16 operands, f32 accumulate (MXU fast path); BN/ReLU on the VPU in f32.
        act = x_ref[...]                                       # [N, Cin*H*W] f32
        for li in range(n_conv_layers):
            w_ref = conv_refs[3 * li]
            s_ref = conv_refs[3 * li + 1]
            b_ref = conv_refs[3 * li + 2]
            y = jnp.dot(act.astype(bf16), w_ref[...], preferred_element_type=f32)
            act = jnp.maximum(y * s_ref[...] + b_ref[...], 0.0)
        # act: [N, T' * D] f32, columns ordered (t', c, m')

        # --- GRU (1 layer, batch_first) -> last hidden -------------------------
        hdim = whh_ref.shape[0]
        d_in = wih_ref.shape[0]
        t_len = act.shape[1] // d_in

        # Hoisted input projection: regroup [N, T'*D] -> [T'*N, D] (static-slice
        # scratch writes, no reshape/relayout), then ONE wide [T'*N, D] x [D, 3H]
        # matmul covering all timesteps and all three gates.
        for t in range(t_len):
            xslab_ref[t * n:(t + 1) * n, :] = act[:, t * d_in:(t + 1) * d_in]
        xgates = jnp.dot(xslab_ref[...].astype(bf16), wih_ref[...],
                         preferred_element_type=f32) + bih_ref[...]   # [T'*N, 3H]

        whh = whh_ref[...]       # [H, 3H] bf16, loaded once before the recurrence
        bhh = bhh_ref[...]       # [1, 3H] f32

        h = jnp.zeros((n, hdim), f32)
        for t in range(t_len):   # only the truly sequential part stays in the loop
            xg = xgates[t * n:(t + 1) * n, :]                            # [N, 3H]
            hg = jnp.dot(h.astype(bf16), whh, preferred_element_type=f32) + bhh
            rz = jax.nn.sigmoid(xg[:, :2 * hdim] + hg[:, :2 * hdim])
            r = rz[:, :hdim]
            z = rz[:, hdim:]
            cand = jnp.tanh(xg[:, 2 * hdim:] + r * hg[:, 2 * hdim:])
            h = (1.0 - z) * cand + z * h                       # PyTorch GRU update

        # --- STL: multi-head attention over the style tokens -------------------
        dh = tok_ref.shape[1]                # per-head dim == token dim
        e = wq_ref.shape[1]
        num_heads = e // dh
        scale = 1.0 / (dh ** 0.5)

        keys = jnp.tanh(tok_ref[...])                          # [Tk, dk] f32
        keys_b = keys.astype(bf16)
        # Full-width projections (one matmul each, 32-lane outputs).
        q = jnp.dot(h.astype(bf16), wq_ref[...], preferred_element_type=f32)  # [N, E]
        k = jnp.dot(keys_b, wk_ref[...], preferred_element_type=f32)          # [Tk, E]
        v = jnp.dot(keys_b, wv_ref[...], preferred_element_type=f32)          # [Tk, E]

        ctx = []
        for hh in range(num_heads):          # tiny per-head score/ctx matmuls
            lo, hi = hh * dh, (hh + 1) * dh
            s = jnp.dot(q[:, lo:hi], k[:, lo:hi].T,
                        preferred_element_type=f32) * scale               # [N, Tk]
            s = s - jnp.max(s, axis=-1, keepdims=True)
            p = jnp.exp(s)
            p = p / jnp.sum(p, axis=-1, keepdims=True)         # exact softmax
            ctx.append(jnp.dot(p, v[:, lo:hi], preferred_element_type=f32))
        # Heads concatenated along lanes -> single lane-dense [N, E] store.
        o_ref[...] = jnp.concatenate(ctx, axis=-1)

    return kernel


def gst_forward(mels, lowered, cfg):
    n, t, m = mels.shape
    e = cfg['E']
    x0 = mels.reshape(n, t * m)                    # NCHW flatten with Cin = 1
    args = [x0]
    for (w, s, b) in lowered['convs']:
        args.extend((w, s, b))
    args.extend(lowered['gru'])                    # w_ih [D,3H], b_ih, w_hh [H,3H], b_hh
    args.extend(lowered['stl'])                    # tokens, wq, wk, wv (full width)

    d_in = lowered['gru'][0].shape[0]
    t_len = lowered['convs'][-1][0].shape[1] // d_in

    style = pl.pallas_call(
        _make_gst_kernel(len(lowered['convs'])),
        out_shape=jax.ShapeDtypeStruct((n, e), jnp.float32),
        in_specs=[_VMEM_SPEC] * len(args),
        out_specs=_VMEM_SPEC,
        scratch_shapes=[pltpu.VMEM((t_len * n, d_in), jnp.float32)],
    )(*args)
    return style.reshape(n, 1, e)                  # [N, 1, E]


# ---------------------------------------------------------------------------
# Parameters (deterministic), in both raw (reference) and kernel-lowered form
# ---------------------------------------------------------------------------
def build_params(key, cfg, t_frames):
    filters = [1] + list(cfg['ref_enc_filters'])
    n_layers = len(cfg['ref_enc_filters'])
    e = cfg['E']
    hdim = e // 2
    num_heads = cfg['num_heads']
    dk = e // num_heads
    eps = 1e-5

    keys = iter(jax.random.split(key, 2 * n_layers + 4 + 4))

    raw_convs, low_convs = [], []
    h_in, w_in = t_frames, cfg['n_mel_channels']
    for li in range(n_layers):
        cin, cout = filters[li], filters[li + 1]
        w_conv = 0.1 * jax.random.normal(next(keys), (cout, cin, 3, 3), jnp.float32)
        b_conv = 0.1 * jax.random.normal(next(keys), (cout,), jnp.float32)
        raw_convs.append((w_conv, b_conv))
        # eval-mode BatchNorm2d, default stats (gamma=1, beta=0, mean=0, var=1);
        # conv bias folded into the BN shift.
        scale_c = np.ones((cout,), np.float32) / np.sqrt(1.0 + eps)
        shift_c = np.asarray(b_conv, np.float32) * scale_c
        mat, col_ch, h_in, w_in = _conv_toeplitz(
            np.asarray(w_conv, np.float32), h_in, w_in,
            time_major_cols=(li == n_layers - 1))
        low_convs.append((jnp.asarray(mat, jnp.bfloat16),            # MXU operand
                          jnp.asarray(scale_c[col_ch]).reshape(1, -1),
                          jnp.asarray(shift_c[col_ch]).reshape(1, -1)))

    d_in = filters[-1] * w_in          # GRU input dim = C_last * M'

    # GRU (gate order r, z, n).  Raw form is per-gate; lowered form merges the
    # gates into [D, 3H] / [H, 3H] so the kernel issues one matmul per path.
    w_ih = 0.1 * jax.random.normal(next(keys), (3, d_in, hdim), jnp.float32)
    w_hh = 0.1 * jax.random.normal(next(keys), (3, hdim, hdim), jnp.float32)
    b_ih = 0.1 * jax.random.normal(next(keys), (3, 1, hdim), jnp.float32)
    b_hh = 0.1 * jax.random.normal(next(keys), (3, 1, hdim), jnp.float32)

    w_ih_m = jnp.concatenate([w_ih[0], w_ih[1], w_ih[2]], axis=1).astype(jnp.bfloat16)
    w_hh_m = jnp.concatenate([w_hh[0], w_hh[1], w_hh[2]], axis=1).astype(jnp.bfloat16)
    b_ih_m = jnp.concatenate([b_ih[0], b_ih[1], b_ih[2]], axis=1)   # f32 [1, 3H]
    b_hh_m = jnp.concatenate([b_hh[0], b_hh[1], b_hh[2]], axis=1)   # f32 [1, 3H]

    tokens = 0.5 * jax.random.normal(next(keys), (cfg['token_num'], dk), jnp.float32)
    wq = 0.1 * jax.random.normal(next(keys), (hdim, e), jnp.float32)
    wk = 0.1 * jax.random.normal(next(keys), (dk, e), jnp.float32)
    wv = 0.1 * jax.random.normal(next(keys), (dk, e), jnp.float32)

    lowered = dict(
        convs=low_convs,
        gru=(w_ih_m, b_ih_m, w_hh_m, b_hh_m),
        stl=(tokens,
             wq.astype(jnp.bfloat16),
             wk.astype(jnp.bfloat16),
             wv.astype(jnp.bfloat16)))
    raw = dict(convs=raw_convs, gru=(w_ih, w_hh, b_ih, b_hh),
               stl=(tokens, wq, wk, wv))
    return lowered, raw


# ---------------------------------------------------------------------------
# Independent pure-JAX reference (real conv2d / GRU loop / per-head attention)
# ---------------------------------------------------------------------------
def reference_forward(mels, raw, cfg):
    n, t, m = mels.shape
    eps = 1e-5
    x = mels.reshape(n, 1, t, m)
    for (w, b) in raw['convs']:
        y = lax.conv_general_dilated(x, w, window_strides=(2, 2),
                                     padding=((1, 1), (1, 1)),
                                     dimension_numbers=('NCHW', 'OIHW', 'NCHW'))
        y = (y + b.reshape(1, -1, 1, 1)) / jnp.sqrt(1.0 + eps)
        x = jnp.maximum(y, 0.0)
    _, c, tp, mp = x.shape
    seq = x.transpose(0, 2, 1, 3).reshape(n, tp, c * mp)       # [N, T', C*M']

    w_ih, w_hh, b_ih, b_hh = raw['gru']
    hdim = w_hh.shape[1]
    h = jnp.zeros((n, hdim), jnp.float32)
    for tt in range(tp):
        x_t = seq[:, tt, :]
        xr, xz, xn = (x_t @ w_ih[0] + b_ih[0], x_t @ w_ih[1] + b_ih[1],
                      x_t @ w_ih[2] + b_ih[2])
        hr, hz, hn = (h @ w_hh[0] + b_hh[0], h @ w_hh[1] + b_hh[1],
                      h @ w_hh[2] + b_hh[2])
        r = jax.nn.sigmoid(xr + hr)
        z = jax.nn.sigmoid(xz + hz)
        cand = jnp.tanh(xn + r * hn)
        h = (1.0 - z) * cand + z * h

    tokens, wq, wk, wv = raw['stl']
    e = wq.shape[1]
    nh = cfg['num_heads']
    dh = e // nh
    key_dim = e // nh
    q = h @ wq
    keys = jnp.tanh(tokens)
    k = keys @ wk
    v = keys @ wv
    outs = []
    for hh in range(nh):
        sl = slice(hh * dh, (hh + 1) * dh)
        s = (q[:, sl] @ k[:, sl].T) / (key_dim ** 0.5)
        p = jax.nn.softmax(s, axis=-1)
        outs.append(p @ v[:, sl])
    return jnp.concatenate(outs, axis=-1).reshape(n, 1, e)


if __name__ == "__main__":
    cfg = MODEL_CONFIG
    root = jax.random.PRNGKey(0)
    pkey, dkey = jax.random.split(root)

    N, T = 8, 16   # N >= 8 so every matmul feeds at least 8 MXU rows
    mels = jax.random.normal(dkey, (N, T, cfg['n_mel_channels']), dtype=jnp.float32)

    lowered, raw = build_params(pkey, cfg, t_frames=T)

    style_embedding = gst_forward(mels, lowered, cfg)
    style_embedding = jax.block_until_ready(style_embedding)

    assert style_embedding.shape == (N, 1, cfg['E'])
    assert bool(jnp.all(jnp.isfinite(style_embedding)))

    # numerical check against the un-lowered f32 model (tolerance covers the
    # bf16 MXU operands in the kernel)
    ref = reference_forward(mels, raw, cfg)
    np.testing.assert_allclose(np.asarray(style_embedding), np.asarray(ref),
                               rtol=5e-2, atol=1e-2)

    print("KERNEL_OK")
</pallas_src>

<mosaic_0001>
module attributes {stable_mosaic.version = 11 : i64} {
  func.func @kernel(%arg0: memref<8x256xf32, #tpu.memory_space<vmem>>, %arg1: memref<256x256xbf16, #tpu.memory_space<vmem>>, %arg2: memref<1x256xf32, #tpu.memory_space<vmem>>, %arg3: memref<1x256xf32, #tpu.memory_space<vmem>>, %arg4: memref<256x128xbf16, #tpu.memory_space<vmem>>, %arg5: memref<1x128xf32, #tpu.memory_space<vmem>>, %arg6: memref<1x128xf32, #tpu.memory_space<vmem>>, %arg7: memref<128x64xbf16, #tpu.memory_space<vmem>>, %arg8: memref<1x64xf32, #tpu.memory_space<vmem>>, %arg9: memref<1x64xf32, #tpu.memory_space<vmem>>, %arg10: memref<32x48xbf16, #tpu.memory_space<vmem>>, %arg11: memref<1x48xf32, #tpu.memory_space<vmem>>, %arg12: memref<16x48xbf16, #tpu.memory_space<vmem>>, %arg13: memref<1x48xf32, #tpu.memory_space<vmem>>, %arg14: memref<8x8xf32, #tpu.memory_space<vmem>>, %arg15: memref<16x32xbf16, #tpu.memory_space<vmem>>, %arg16: memref<8x32xbf16, #tpu.memory_space<vmem>>, %arg17: memref<8x32xbf16, #tpu.memory_space<vmem>>, %arg18: memref<8x32xf32, #tpu.memory_space<vmem>>, %arg19: memref<16x32xf32, #tpu.memory_space<vmem>>) attributes {dimension_semantics = [], scalar_prefetch = 0 : i64, scratch_operands = 1 : i64, tpu.core_type = #tpu.core_type<tc>} {
    %c0 = arith.constant 0 : index
    %c0_0 = arith.constant 0 : index
    %0 = vector.load %arg0[%c0, %c0_0] : memref<8x256xf32, #tpu.memory_space<vmem>>, vector<8x256xf32>
    %1 = arith.truncf %0 : vector<8x256xf32> to vector<8x256xbf16>
    %c0_1 = arith.constant 0 : index
    %c0_2 = arith.constant 0 : index
    %2 = vector.load %arg1[%c0_1, %c0_2] : memref<256x256xbf16, #tpu.memory_space<vmem>>, vector<256x256xbf16>
    %cst = arith.constant dense<0.000000e+00> : vector<8x256xf32>
    %3 = tpu.matmul %1, %2, %cst {dimension_numbers = #tpu.dot_dimension_numbers<[1], [0], [0], [1], [0, 0, 1, 1], [], []>} : vector<8x256xbf16>, vector<256x256xbf16>, vector<8x256xf32> -> vector<8x256xf32>
    %c0_3 = arith.constant 0 : index
    %c0_4 = arith.constant 0 : index
    %4 = vector.load %arg2[%c0_3, %c0_4] : memref<1x256xf32, #tpu.memory_space<vmem>>, vector<1x256xf32>
    %5 = vector.broadcast %4 : vector<1x256xf32> to vector<8x256xf32>
    %6 = arith.mulf %3, %5 : vector<8x256xf32>
    %c0_5 = arith.constant 0 : index
    %c0_6 = arith.constant 0 : index
    %7 = vector.load %arg3[%c0_5, %c0_6] : memref<1x256xf32, #tpu.memory_space<vmem>>, vector<1x256xf32>
    %8 = vector.broadcast %7 : vector<1x256xf32> to vector<8x256xf32>
    %9 = arith.addf %6, %8 : vector<8x256xf32>
    %cst_7 = arith.constant 0.000000e+00 : f32
    %10 = vector.broadcast %cst_7 : f32 to vector<8x256xf32>
    %11 = arith.maximumf %9, %10 : vector<8x256xf32>
    %12 = arith.truncf %11 : vector<8x256xf32> to vector<8x256xbf16>
    %c0_8 = arith.constant 0 : index
    %c0_9 = arith.constant 0 : index
    %13 = vector.load %arg4[%c0_8, %c0_9] : memref<256x128xbf16, #tpu.memory_space<vmem>>, vector<256x128xbf16>
    %cst_10 = arith.constant dense<0.000000e+00> : vector<8x128xf32>
    %14 = tpu.matmul %12, %13, %cst_10 {dimension_numbers = #tpu.dot_dimension_numbers<[1], [0], [0], [1], [0, 0, 1, 1], [], []>} : vector<8x256xbf16>, vector<256x128xbf16>, vector<8x128xf32> -> vector<8x128xf32>
    %c0_11 = arith.constant 0 : index
    %c0_12 = arith.constant 0 : index
    %15 = vector.load %arg5[%c0_11, %c0_12] : memref<1x128xf32, #tpu.memory_space<vmem>>, vector<1x128xf32>
    %16 = vector.broadcast %15 : vector<1x128xf32> to vector<8x128xf32>
    %17 = arith.mulf %14, %16 : vector<8x128xf32>
    %c0_13 = arith.constant 0 : index
    %c0_14 = arith.constant 0 : index
    %18 = vector.load %arg6[%c0_13, %c0_14] : memref<1x128xf32, #tpu.memory_space<vmem>>, vector<1x128xf32>
    %19 = vector.broadcast %18 : vector<1x128xf32> to vector<8x128xf32>
    %20 = arith.addf %17, %19 : vector<8x128xf32>
    %cst_15 = arith.constant 0.000000e+00 : f32
    %21 = vector.broadcast %cst_15 : f32 to vector<8x128xf32>
    %22 = arith.maximumf %20, %21 : vector<8x128xf32>
    %23 = arith.truncf %22 : vector<8x128xf32> to vector<8x128xbf16>
    %c0_16 = arith.constant 0 : index
    %c0_17 = arith.constant 0 : index
    %24 = vector.load %arg7[%c0_16, %c0_17] : memref<128x64xbf16, #tpu.memory_space<vmem>>, vector<128x64xbf16>
    %cst_18 = arith.constant dense<0.000000e+00> : vector<8x64xf32>
    %25 = tpu.matmul %23, %24, %cst_18 {dimension_numbers = #tpu.dot_dimension_numbers<[1], [0], [0], [1], [0, 0, 1, 1], [], []>} : vector<8x128xbf16>, vector<128x64xbf16>, vector<8x64xf32> -> vector<8x64xf32>
    %c0_19 = arith.constant 0 : index
    %c0_20 = arith.constant 0 : index
    %26 = vector.load %arg8[%c0_19, %c0_20] : memref<1x64xf32, #tpu.memory_space<vmem>>, vector<1x64xf32>
    %27 = vector.broadcast %26 : vector<1x64xf32> to vector<8x64xf32>
    %28 = arith.mulf %25, %27 : vector<8x64xf32>
    %c0_21 = arith.constant 0 : index
    %c0_22 = arith.constant 0 : index
    %29 = vector.load %arg9[%c0_21, %c0_22] : memref<1x64xf32, #tpu.memory_space<vmem>>, vector<1x64xf32>
    %30 = vector.broadcast %29 : vector<1x64xf32> to vector<8x64xf32>
    %31 = arith.addf %28, %30 : vector<8x64xf32>
    %cst_23 = arith.constant 0.000000e+00 : f32
    %32 = vector.broadcast %cst_23 : f32 to vector<8x64xf32>
    %33 = arith.maximumf %31, %32 : vector<8x64xf32>
    %34 = vector.extract_strided_slice %33 {offsets = [0, 0], sizes = [8, 32], strides = [1, 1]} : vector<8x64xf32> to vector<8x32xf32>
    %c0_24 = arith.constant 0 : index
    %c0_25 = arith.constant 0 : index
    %35 = vector.load %arg19[%c0_24, %c0_25] : memref<16x32xf32, #tpu.memory_space<vmem>>, vector<8x32xf32>
    tpu.vector_store %arg19[%c0_24, %c0_25], %34 {strides = array<i32>} : memref<16x32xf32, #tpu.memory_space<vmem>>, vector<8x32xf32>,
    %36 = vector.extract_strided_slice %33 {offsets = [0, 32], sizes = [8, 32], strides = [1, 1]} : vector<8x64xf32> to vector<8x32xf32>
    %c8 = arith.constant 8 : index
    %c0_26 = arith.constant 0 : index
    %37 = vector.load %arg19[%c8, %c0_26] : memref<16x32xf32, #tpu.memory_space<vmem>>, vector<8x32xf32>
    tpu.vector_store %arg19[%c8, %c0_26], %36 {strides = array<i32>} : memref<16x32xf32, #tpu.memory_space<vmem>>, vector<8x32xf32>,
    %c0_27 = arith.constant 0 : index
    %c0_28 = arith.constant 0 : index
    %38 = vector.load %arg19[%c0_27, %c0_28] : memref<16x32xf32, #tpu.memory_space<vmem>>, vector<16x32xf32>
    %39 = arith.truncf %38 : vector<16x32xf32> to vector<16x32xbf16>
    %c0_29 = arith.constant 0 : index
    %c0_30 = arith.constant 0 : index
    %40 = vector.load %arg10[%c0_29, %c0_30] : memref<32x48xbf16, #tpu.memory_space<vmem>>, vector<32x48xbf16>
    %cst_31 = arith.constant dense<0.000000e+00> : vector<16x48xf32>
    %41 = tpu.matmul %39, %40, %cst_31 {dimension_numbers = #tpu.dot_dimension_numbers<[1], [0], [0], [1], [0, 0, 1, 1], [], []>} : vector<16x32xbf16>, vector<32x48xbf16>, vector<16x48xf32> -> vector<16x48xf32>
    %c0_32 = arith.constant 0 : index
    %c0_33 = arith.constant 0 : index
    %42 = vector.load %arg11[%c0_32, %c0_33] : memref<1x48xf32, #tpu.memory_space<vmem>>, vector<1x48xf32>
    %43 = vector.broadcast %42 : vector<1x48xf32> to vector<16x48xf32>
    %44 = arith.addf %41, %43 : vector<16x48xf32>
    %c0_34 = arith.constant 0 : index
    %c0_35 = arith.constant 0 : index
    %45 = vector.load %arg12[%c0_34, %c0_35] : memref<16x48xbf16, #tpu.memory_space<vmem>>, vector<16x48xbf16>
    %c0_36 = arith.constant 0 : index
    %c0_37 = arith.constant 0 : index
    %46 = vector.load %arg13[%c0_36, %c0_37] : memref<1x48xf32, #tpu.memory_space<vmem>>, vector<1x48xf32>
    %cst_38 = arith.constant 0.000000e+00 : f32
    %47 = vector.broadcast %cst_38 : f32 to vector<8x16xf32>
    %48 = vector.extract_strided_slice %44 {offsets = [0, 0], sizes = [8, 48], strides = [1, 1]} : vector<16x48xf32> to vector<8x48xf32>
    %49 = arith.truncf %47 : vector<8x16xf32> to vector<8x16xbf16>
    %cst_39 = arith.constant dense<0.000000e+00> : vector<8x48xf32>
    %50 = tpu.matmul %49, %45, %cst_39 {dimension_numbers = #tpu.dot_dimension_numbers<[1], [0], [0], [1], [0, 0, 1, 1], [], []>} : vector<8x16xbf16>, vector<16x48xbf16>, vector<8x48xf32> -> vector<8x48xf32>
    %51 = vector.broadcast %46 : vector<1x48xf32> to vector<8x48xf32>
    %52 = arith.addf %50, %51 : vector<8x48xf32>
    %53 = vector.extract_strided_slice %48 {offsets = [0, 0], sizes = [8, 32], strides = [1, 1]} : vector<8x48xf32> to vector<8x32xf32>
    %54 = vector.extract_strided_slice %52 {offsets = [0, 0], sizes = [8, 32], strides = [1, 1]} : vector<8x48xf32> to vector<8x32xf32>
    %55 = arith.addf %53, %54 : vector<8x32xf32>
    %56 = arith.negf %55 : vector<8x32xf32>
    %57 = math.exp %56 : vector<8x32xf32>
    %cst_40 = arith.constant 1.000000e+00 : f32
    %58 = vector.broadcast %cst_40 : f32 to vector<8x32xf32>
    %59 = arith.addf %58, %57 : vector<8x32xf32>
    %60 = arith.divf %58, %59 : vector<8x32xf32>
    %61 = vector.extract_strided_slice %60 {offsets = [0, 0], sizes = [8, 16], strides = [1, 1]} : vector<8x32xf32> to vector<8x16xf32>
    %62 = vector.extract_strided_slice %60 {offsets = [0, 16], sizes = [8, 16], strides = [1, 1]} : vector<8x32xf32> to vector<8x16xf32>
    %63 = vector.extract_strided_slice %48 {offsets = [0, 32], sizes = [8, 16], strides = [1, 1]} : vector<8x48xf32> to vector<8x16xf32>
    %64 = vector.extract_strided_slice %52 {offsets = [0, 32], sizes = [8, 16], strides = [1, 1]} : vector<8x48xf32> to vector<8x16xf32>
    %65 = arith.mulf %61, %64 : vector<8x16xf32>
    %66 = arith.addf %63, %65 : vector<8x16xf32>
    %67 = math.tanh %66 : vector<8x16xf32>
    %cst_41 = arith.constant 1.000000e+00 : f32
    %68 = vector.broadcast %cst_41 : f32 to vector<8x16xf32>
    %69 = arith.subf %68, %62 : vector<8x16xf32>
    %70 = arith.mulf %69, %67 : vector<8x16xf32>
    %71 = arith.mulf %62, %47 : vector<8x16xf32>
    %72 = arith.addf %70, %71 : vector<8x16xf32>
    %73 = vector.extract_strided_slice %44 {offsets = [8, 0], sizes = [8, 48], strides = [1, 1]} : vector<16x48xf32> to vector<8x48xf32>
    %74 = arith.truncf %72 : vector<8x16xf32> to vector<8x16xbf16>
    %cst_42 = arith.constant dense<0.000000e+00> : vector<8x48xf32>
    %75 = tpu.matmul %74, %45, %cst_42 {dimension_numbers = #tpu.dot_dimension_numbers<[1], [0], [0], [1], [0, 0, 1, 1], [], []>} : vector<8x16xbf16>, vector<16x48xbf16>, vector<8x48xf32> -> vector<8x48xf32>
    %76 = vector.broadcast %46 : vector<1x48xf32> to vector<8x48xf32>
    %77 = arith.addf %75, %76 : vector<8x48xf32>
    %78 = vector.extract_strided_slice %73 {offsets = [0, 0], sizes = [8, 32], strides = [1, 1]} : vector<8x48xf32> to vector<8x32xf32>
    %79 = vector.extract_strided_slice %77 {offsets = [0, 0], sizes = [8, 32], strides = [1, 1]} : vector<8x48xf32> to vector<8x32xf32>
    %80 = arith.addf %78, %79 : vector<8x32xf32>
    %81 = arith.negf %80 : vector<8x32xf32>
    %82 = math.exp %81 : vector<8x32xf32>
    %cst_43 = arith.constant 1.000000e+00 : f32
    %83 = vector.broadcast %cst_43 : f32 to vector<8x32xf32>
    %84 = arith.addf %83, %82 : vector<8x32xf32>
    %85 = arith.divf %83, %84 : vector<8x32xf32>
    %86 = vector.extract_strided_slice %85 {offsets = [0, 0], sizes = [8, 16], strides = [1, 1]} : vector<8x32xf32> to vector<8x16xf32>
    %87 = vector.extract_strided_slice %85 {offsets = [0, 16], sizes = [8, 16], strides = [1, 1]} : vector<8x32xf32> to vector<8x16xf32>
    %88 = vector.extract_strided_slice %73 {offsets = [0, 32], sizes = [8, 16], strides = [1, 1]} : vector<8x48xf32> to vector<8x16xf32>
    %89 = vector.extract_strided_slice %77 {offsets = [0, 32], sizes = [8, 16], strides = [1, 1]} : vector<8x48xf32> to vector<8x16xf32>
    %90 = arith.mulf %86, %89 : vector<8x16xf32>
    %91 = arith.addf %88, %90 : vector<8x16xf32>
    %92 = math.tanh %91 : vector<8x16xf32>
    %cst_44 = arith.constant 1.000000e+00 : f32
    %93 = vector.broadcast %cst_44 : f32 to vector<8x16xf32>
    %94 = arith.subf %93, %87 : vector<8x16xf32>
    %95 = arith.mulf %94, %92 : vector<8x16xf32>
    %96 = arith.mulf %87, %72 : vector<8x16xf32>
    %97 = arith.addf %95, %96 : vector<8x16xf32>
    %c0_45 = arith.constant 0 : index
    %c0_46 = arith.constant 0 : index
    %98 = vector.load %arg14[%c0_45, %c0_46] : memref<8x8xf32, #tpu.memory_space<vmem>>, vector<8x8xf32>
    %99 = math.tanh %98 : vector<8x8xf32>
    %100 = arith.truncf %99 : vector<8x8xf32> to vector<8x8xbf16>
    %101 = arith.truncf %97 : vector<8x16xf32> to vector<8x16xbf16>
    %c0_47 = arith.constant 0 : index
    %c0_48 = arith.constant 0 : index
    %102 = vector.load %arg15[%c0_47, %c0_48] : memref<16x32xbf16, #tpu.memory_space<vmem>>, vector<16x32xbf16>
    %cst_49 = arith.constant dense<0.000000e+00> : vector<8x32xf32>
    %103 = tpu.matmul %101, %102, %cst_49 {dimension_numbers = #tpu.dot_dimension_numbers<[1], [0], [0], [1], [0, 0, 1, 1], [], []>} : vector<8x16xbf16>, vector<16x32xbf16>, vector<8x32xf32> -> vector<8x32xf32>
    %c0_50 = arith.constant 0 : index
    %c0_51 = arith.constant 0 : index
    %104 = vector.load %arg16[%c0_50, %c0_51] : memref<8x32xbf16, #tpu.memory_space<vmem>>, vector<8x32xbf16>
    %cst_52 = arith.constant dense<0.000000e+00> : vector<8x32xf32>
    %105 = tpu.matmul %100, %104, %cst_52 {dimension_numbers = #tpu.dot_dimension_numbers<[1], [0], [0], [1], [0, 0, 1, 1], [], []>} : vector<8x8xbf16>, vector<8x32xbf16>, vector<8x32xf32> -> vector<8x32xf32>
    %c0_53 = arith.constant 0 : index
    %c0_54 = arith.constant 0 : index
    %106 = vector.load %arg17[%c0_53, %c0_54] : memref<8x32xbf16, #tpu.memory_space<vmem>>, vector<8x32xbf16>
    %cst_55 = arith.constant dense<0.000000e+00> : vector<8x32xf32>
    %107 = tpu.matmul %100, %106, %cst_55 {dimension_numbers = #tpu.dot_dimension_numbers<[1], [0], [0], [1], [0, 0, 1, 1], [], []>} : vector<8x8xbf16>, vector<8x32xbf16>, vector<8x32xf32> -> vector<8x32xf32>
    %108 = vector.extract_strided_slice %103 {offsets = [0, 0], sizes = [8, 8], strides = [1, 1]} : vector<8x32xf32> to vector<8x8xf32>
    %109 = vector.extract_strided_slice %105 {offsets = [0, 0], sizes = [8, 8], strides = [1, 1]} : vector<8x32xf32> to vector<8x8xf32>
    %110 = tpu.transpose %109, [1, 0] : vector<8x8xf32> -> vector<8x8xf32>
    %cst_56 = arith.constant dense<0.000000e+00> : vector<8x8xf32>
    %111 = tpu.matmul %108, %110, %cst_56 {dimension_numbers = #tpu.dot_dimension_numbers<[1], [0], [0], [1], [0, 0, 1, 1], [], []>} : vector<8x8xf32>, vector<8x8xf32>, vector<8x8xf32> -> vector<8x8xf32>
    %cst_57 = arith.constant 0.353553385 : f32
    %112 = vector.broadcast %cst_57 : f32 to vector<8x8xf32>
    %113 = arith.mulf %111, %112 : vector<8x8xf32>
    %cst_58 = arith.constant dense<0xFF800000> : vector<8xf32>
    %114 = vector.multi_reduction <maximumf>, %113, %cst_58 [1] : vector<8x8xf32> to vector<8xf32>
    %115 = vector.shape_cast %114 : vector<8xf32> to vector<8x1xf32>
    %116 = vector.broadcast %115 : vector<8x1xf32> to vector<8x8xf32>
    %117 = arith.subf %113, %116 : vector<8x8xf32>
    %118 = math.exp %117 : vector<8x8xf32>
    %cst_59 = arith.constant dense<0.000000e+00> : vector<8xf32>
    %119 = vector.multi_reduction <add>, %118, %cst_59 [1] : vector<8x8xf32> to vector<8xf32>
    %120 = vector.shape_cast %119 : vector<8xf32> to vector<8x1xf32>
    %121 = vector.broadcast %120 : vector<8x1xf32> to vector<8x8xf32>
    %122 = arith.divf %118, %121 : vector<8x8xf32>
    %123 = vector.extract_strided_slice %107 {offsets = [0, 0], sizes = [8, 8], strides = [1, 1]} : vector<8x32xf32> to vector<8x8xf32>
    %cst_60 = arith.constant dense<0.000000e+00> : vector<8x8xf32>
    %124 = tpu.matmul %122, %123, %cst_60 {dimension_numbers = #tpu.dot_dimension_numbers<[1], [0], [0], [1], [0, 0, 1, 1], [], []>} : vector<8x8xf32>, vector<8x8xf32>, vector<8x8xf32> -> vector<8x8xf32>
    %125 = vector.extract_strided_slice %103 {offsets = [0, 8], sizes = [8, 8], strides = [1, 1]} : vector<8x32xf32> to vector<8x8xf32>
    %126 = vector.extract_strided_slice %105 {offsets = [0, 8], sizes = [8, 8], strides = [1, 1]} : vector<8x32xf32> to vector<8x8xf32>
    %127 = tpu.transpose %126, [1, 0] : vector<8x8xf32> -> vector<8x8xf32>
    %cst_61 = arith.constant dense<0.000000e+00> : vector<8x8xf32>
    %128 = tpu.matmul %125, %127, %cst_61 {dimension_numbers = #tpu.dot_dimension_numbers<[1], [0], [0], [1], [0, 0, 1, 1], [], []>} : vector<8x8xf32>, vector<8x8xf32>, vector<8x8xf32> -> vector<8x8xf32>
    %cst_62 = arith.constant 0.353553385 : f32
    %129 = vector.broadcast %cst_62 : f32 to vector<8x8xf32>
    %130 = arith.mulf %128, %129 : vector<8x8xf32>
    %cst_63 = arith.constant dense<0xFF800000> : vector<8xf32>
    %131 = vector.multi_reduction <maximumf>, %130, %cst_63 [1] : vector<8x8xf32> to vector<8xf32>
    %132 = vector.shape_cast %131 : vector<8xf32> to vector<8x1xf32>
    %133 = vector.broadcast %132 : vector<8x1xf32> to vector<8x8xf32>
    %134 = arith.subf %130, %133 : vector<8x8xf32>
    %135 = math.exp %134 : vector<8x8xf32>
    %cst_64 = arith.constant dense<0.000000e+00> : vector<8xf32>
    %136 = vector.multi_reduction <add>, %135, %cst_64 [1] : vector<8x8xf32> to vector<8xf32>
    %137 = vector.shape_cast %136 : vector<8xf32> to vector<8x1xf32>
    %138 = vector.broadcast %137 : vector<8x1xf32> to vector<8x8xf32>
    %139 = arith.divf %135, %138 : vector<8x8xf32>
    %140 = vector.extract_strided_slice %107 {offsets = [0, 8], sizes = [8, 8], strides = [1, 1]} : vector<8x32xf32> to vector<8x8xf32>
    %cst_65 = arith.constant dense<0.000000e+00> : vector<8x8xf32>
    %141 = tpu.matmul %139, %140, %cst_65 {dimension_numbers = #tpu.dot_dimension_numbers<[1], [0], [0], [1], [0, 0, 1, 1], [], []>} : vector<8x8xf32>, vector<8x8xf32>, vector<8x8xf32> -> vector<8x8xf32>
    %142 = vector.extract_strided_slice %103 {offsets = [0, 16], sizes = [8, 8], strides = [1, 1]} : vector<8x32xf32> to vector<8x8xf32>
    %143 = vector.extract_strided_slice %105 {offsets = [0, 16], sizes = [8, 8], strides = [1, 1]} : vector<8x32xf32> to vector<8x8xf32>
    %144 = tpu.transpose %143, [1, 0] : vector<8x8xf32> -> vector<8x8xf32>
    %cst_66 = arith.constant dense<0.000000e+00> : vector<8x8xf32>
    %145 = tpu.matmul %142, %144, %cst_66 {dimension_numbers = #tpu.dot_dimension_numbers<[1], [0], [0], [1], [0, 0, 1, 1], [], []>} : vector<8x8xf32>, vector<8x8xf32>, vector<8x8xf32> -> vector<8x8xf32>
    %cst_67 = arith.constant 0.353553385 : f32
    %146 = vector.broadcast %cst_67 : f32 to vector<8x8xf32>
    %147 = arith.mulf %145, %146 : vector<8x8xf32>
    %cst_68 = arith.constant dense<0xFF800000> : vector<8xf32>
    %148 = vector.multi_reduction <maximumf>, %147, %cst_68 [1] : vector<8x8xf32> to vector<8xf32>
    %149 = vector.shape_cast %148 : vector<8xf32> to vector<8x1xf32>
    %150 = vector.broadcast %149 : vector<8x1xf32> to vector<8x8xf32>
    %151 = arith.subf %147, %150 : vector<8x8xf32>
    %152 = math.exp %151 : vector<8x8xf32>
    %cst_69 = arith.constant dense<0.000000e+00> : vector<8xf32>
    %153 = vector.multi_reduction <add>, %152, %cst_69 [1] : vector<8x8xf32> to vector<8xf32>
    %154 = vector.shape_cast %153 : vector<8xf32> to vector<8x1xf32>
    %155 = vector.broadcast %154 : vector<8x1xf32> to vector<8x8xf32>
    %156 = arith.divf %152, %155 : vector<8x8xf32>
    %157 = vector.extract_strided_slice %107 {offsets = [0, 16], sizes = [8, 8], strides = [1, 1]} : vector<8x32xf32> to vector<8x8xf32>
    %cst_70 = arith.constant dense<0.000000e+00> : vector<8x8xf32>
    %158 = tpu.matmul %156, %157, %cst_70 {dimension_numbers = #tpu.dot_dimension_numbers<[1], [0], [0], [1], [0, 0, 1, 1], [], []>} : vector<8x8xf32>, vector<8x8xf32>, vector<8x8xf32> -> vector<8x8xf32>
    %159 = vector.extract_strided_slice %103 {offsets = [0, 24], sizes = [8, 8], strides = [1, 1]} : vector<8x32xf32> to vector<8x8xf32>
    %160 = vector.extract_strided_slice %105 {offsets = [0, 24], sizes = [8, 8], strides = [1, 1]} : vector<8x32xf32> to vector<8x8xf32>
    %161 = tpu.transpose %160, [1, 0] : vector<8x8xf32> -> vector<8x8xf32>
    %cst_71 = arith.constant dense<0.000000e+00> : vector<8x8xf32>
    %162 = tpu.matmul %159, %161, %cst_71 {dimension_numbers = #tpu.dot_dimension_numbers<[1], [0], [0], [1], [0, 0, 1, 1], [], []>} : vector<8x8xf32>, vector<8x8xf32>, vector<8x8xf32> -> vector<8x8xf32>
    %cst_72 = arith.constant 0.353553385 : f32
    %163 = vector.broadcast %cst_72 : f32 to vector<8x8xf32>
    %164 = arith.mulf %162, %163 : vector<8x8xf32>
    %cst_73 = arith.constant dense<0xFF800000> : vector<8xf32>
    %165 = vector.multi_reduction <maximumf>, %164, %cst_73 [1] : vector<8x8xf32> to vector<8xf32>
    %166 = vector.shape_cast %165 : vector<8xf32> to vector<8x1xf32>
    %167 = vector.broadcast %166 : vector<8x1xf32> to vector<8x8xf32>
    %168 = arith.subf %164, %167 : vector<8x8xf32>
    %169 = math.exp %168 : vector<8x8xf32>
    %cst_74 = arith.constant dense<0.000000e+00> : vector<8xf32>
    %170 = vector.multi_reduction <add>, %169, %cst_74 [1] : vector<8x8xf32> to vector<8xf32>
    %171 = vector.shape_cast %170 : vector<8xf32> to vector<8x1xf32>
    %172 = vector.broadcast %171 : vector<8x1xf32> to vector<8x8xf32>
    %173 = arith.divf %169, %172 : vector<8x8xf32>
    %174 = vector.extract_strided_slice %107 {offsets = [0, 24], sizes = [8, 8], strides = [1, 1]} : vector<8x32xf32> to vector<8x8xf32>
    %cst_75 = arith.constant dense<0.000000e+00> : vector<8x8xf32>
    %175 = tpu.matmul %173, %174, %cst_75 {dimension_numbers = #tpu.dot_dimension_numbers<[1], [0], [0], [1], [0, 0, 1, 1], [], []>} : vector<8x8xf32>, vector<8x8xf32>, vector<8x8xf32> -> vector<8x8xf32>
    %176 = tpu.concatenate %124, %141, %158, %175 in 1 : vector<8x8xf32>, vector<8x8xf32>, vector<8x8xf32>, vector<8x8xf32> -> vector<8x32xf32>
    %c0_76 = arith.constant 0 : index
    %c0_77 = arith.constant 0 : index
    %177 = vector.load %arg18[%c0_76, %c0_77] : memref<8x32xf32, #tpu.memory_space<vmem>>, vector<8x32xf32>
    tpu.vector_store %arg18[%c0_76, %c0_77], %176 {strides = array<i32>} : memref<8x32xf32, #tpu.memory_space<vmem>>, vector<8x32xf32>,
    return
  }
}

</mosaic_0001>

<bundles_post_ra>
// kernel: tpu_custom_call.1
= control target key start
LH: loop header
LB: loop body
LE: loop exit
PB: predicated region body
PF: predicated region fallthrough
CT: control target
= control target key end

     0   :  { %s2510_s0 = inlined_call_operand.vmem [shape: f32[8,256], index: 0, kind: input, shape index: {}]   ;;  %s2511_s1 = inlined_call_operand.hbm [shape: bf16[256,256], index: 1, kind: input, shape index: {}]   ;;  %s2512_s2 = inlined_call_operand.vmem [shape: f32[1,256], index: 2, kind: input, shape index: {}]   ;;  %s2513_s3 = inlined_call_operand.vmem [shape: f32[1,256], index: 3, kind: input, shape index: {}]   ;;  %s2514_s4 = inlined_call_operand.hbm [shape: bf16[256,128], index: 4, kind: input, shape index: {}]   ;;  %s2515_s5 = inlined_call_operand.vmem [shape: f32[1,128], index: 5, kind: input, shape index: {}]   ;;  %s2516_s6 = inlined_call_operand.vmem [shape: f32[1,128], index: 6, kind: input, shape index: {}]   ;;  %s2517_s7 = inlined_call_operand.vmem [shape: bf16[128,64], index: 7, kind: input, shape index: {}]   ;;  %s2518_s8 = inlined_call_operand.vmem [shape: f32[1,64], index: 8, kind: input, shape index: {}]   ;;  %s2519_s9 = inlined_call_operand.vmem [shape: f32[1,64], index: 9, kind: input, shape index: {}]   ;;  %s2520_s10 = inlined_call_operand.vmem [shape: bf16[32,48], index: 10, kind: input, shape index: {}]   ;;  %s2521_s11 = inlined_call_operand.vmem [shape: f32[1,48], index: 11, kind: input, shape index: {}]   ;;  %s2522_s12 = inlined_call_operand.vmem [shape: bf16[16,48], index: 12, kind: input, shape index: {}]   ;;  %s2523_s13 = inlined_call_operand.vmem [shape: f32[1,48], index: 13, kind: input, shape index: {}]   ;;  %s2524_s14 = inlined_call_operand.vmem [shape: f32[8,8], index: 14, kind: input, shape index: {}]   ;;  %s2525_s15 = inlined_call_operand.vmem [shape: bf16[16,32], index: 15, kind: input, shape index: {}]   ;;  %s2526_s16 = inlined_call_operand.vmem [shape: bf16[8,32], index: 16, kind: input, shape index: {}]   ;;  %s2527_s17 = inlined_call_operand.vmem [shape: bf16[8,32], index: 17, kind: input, shape index: {}]   ;;  %s2528_s18 = inlined_call_operand.hbm [shape: f32[8,32], index: 18, kind: output, shape index: {}]  }
   0x1   :  { %2532 = sst [smem:[#allocation12_spill]] %s2510_s0 }
   0x2   :  { %2533 = sst [smem:[#allocation13_spill]] %s2511_s1 }
   0x3   :  { %2534 = sst [smem:[#allocation14_spill]] %s2512_s2 }
   0x4   :  { %2535 = sst [smem:[#allocation15_spill]] %s2528_s18 }
   0x5   :  { %23 = vsyncpa [#allocation4], 0 }
   0x6   :  { %24 = vsyncpa [#allocation7], 0 }
   0x7   :  { %25 = vsyncpa [#allocation5], 0  ;;  %s2182_s27 = smov [#allocation3]   ;;  %s2536_s0 = sld [smem:[#allocation13_spill]] }
   0x8   :  { %s33_s28 = sshll.u32 %s2182_s27, 4  ;;  %s34_s28 = int_to_ptr.vmem [resolvable:$true] %s33_s28 }
   0xd   :  { %s2110_s19 = scalar_lea.hbm %s2536_s0, 4096 }
   0xe   :  { %p2111_p0 = scmp.ne.s32.totalorder %s2536_s0, %s2110_s19  ;;  %p2114_p1 = scmp.lt.u32.totalorder %s2110_s19, %s2536_s0 }
  0x10   :  { %p2116_p2 = pnand %p2114_p1, %p2111_p0 }
  0x12   :  { %2119 = shalt.err (!%p2116_p2)
}
  0x13   :  { %s2120_s2 = scalar_lea.vmem %s34_s28, 4096  ;;  %p2125_p4 = scmp.lt.s32.totalorder %s34_s28, %s34_s28 }
  0x14   :  { %p2121_p3 = scmp.ne.s32.totalorder %s34_s28, %s2120_s2  ;;  %p2126_p5 = scmp.lt.s32.totalorder %s2120_s2, %s2120_s2 }
  0x16   :  { %p2127_p6 = por %p2126_p5, %p2125_p4 }
  0x18   :  { %p2128_p7 = pnand %p2127_p6, %p2121_p3 }
  0x1a   :  { %2131 = shalt.err (!%p2128_p7)
}
  0x1b   :  { %s2183_s23 = smov 128   ;;  %s2184_s24 = smov 8  }
  0x1c   :  { %39 = dma.hbm_to_vmem [thread:$0]  %s2536_s0, 4096, %s34_s28, [#allocation4], %s2183_s23, %s2183_s23, %s2184_s24  }
  0x1d   :  { %s2185_s27 = smov [#allocation6]   ;;  %s2132_s1 = scalar_lea.hbm %s2514_s4, 2048 }
  0x1e   :  { %s49_s29 = sshll.u32 %s2185_s27, 4  ;;  %p2133_p8 = scmp.ne.s32.totalorder %s2514_s4, %s2132_s1  ;;  %s50_s29 = int_to_ptr.vmem [resolvable:$true] %s49_s29 }
  0x1f   :  { %p2136_p9 = scmp.lt.u32.totalorder %s2132_s1, %s2514_s4 }
  0x21   :  { %p2138_p10 = pnand %p2136_p9, %p2133_p8 }
  0x23   :  { %2141 = shalt.err (!%p2138_p10)
}
  0x24   :  { %s2142_s18 = scalar_lea.vmem %s50_s29, 2048  ;;  %p2147_p12 = scmp.lt.s32.totalorder %s50_s29, %s50_s29 }
  0x25   :  { %p2143_p11 = scmp.ne.s32.totalorder %s50_s29, %s2142_s18  ;;  %p2148_p13 = scmp.lt.s32.totalorder %s2142_s18, %s2142_s18 }
  0x27   :  { %p2149_p0 = por %p2148_p13, %p2147_p12 }
  0x29   :  { %p2150_p1 = pnand %p2149_p0, %p2143_p11 }
  0x2b   :  { %2153 = shalt.err (!%p2150_p1)
}
  0x2c   :  { %s2186_s28 = smov 64   ;;  %s2187_s0 = smov 4  }
  0x2d   :  { %55 = dma.hbm_to_vmem [thread:$0]  %s2514_s4, 2048, %s50_s29, [#allocation7], %s2186_s28, %s2186_s28, %s2187_s0  }
  0x2e   :  { %2176 = dma.done.wait [#allocation4], 4096  }
  0x2f   :  { %2177 = vsyncadd [#allocation4], 4294963200 }
  0x30   :  { %2178 = dma.done.wait [#allocation7], 2048  }
  0x31   :  { %2179 = vsyncadd [#allocation7], 4294965248  ;;  %v2004_v0 = vld [vmem:[#allocation3 + $0x4] ss:$8 sps:$4 sm:$0xff]   ;;  %v2006_v1 = vld [vmem:[#allocation3] ss:$8 sps:$4 sm:$0xff]   ;;  %v328_v53 = vlaneseq }
  0x32   :  { %285 = vmatprep.subr.bf16.mxu0 %v2004_v0  ;;  %v2007_v2 = vld [vmem:[#allocation3 + $0x14] ss:$8 sps:$4 sm:$0xff]   ;;  %v2009_v3 = vld [vmem:[#allocation3 + $0x10] ss:$8 sps:$4 sm:$0xff]   ;;  %v2010_v4 = vld [vmem:[#allocation3 + $0x24] ss:$8 sps:$4 sm:$0xff]  }
  0x33   :  { %286 = vmatpush1.bf16.msra.mxu0 %v2006_v1  ;;  %v2012_v5 = vld [vmem:[#allocation3 + $0x20] ss:$8 sps:$4 sm:$0xff]   ;;  %v2013_v6 = vld [vmem:[#allocation3 + $0x34] ss:$8 sps:$4 sm:$0xff]   ;;  %v2015_v7 = vld [vmem:[#allocation3 + $0x30] ss:$8 sps:$4 sm:$0xff]  }
  0x34   :  { %287 = vmatprep.subr.bf16.mxu0 %v2007_v2  ;;  %v2016_v8 = vld [vmem:[#allocation3 + $0x44] ss:$8 sps:$4 sm:$0xff]   ;;  %v2018_v9 = vld [vmem:[#allocation3 + $0x40] ss:$8 sps:$4 sm:$0xff]   ;;  %v2019_v10 = vld [vmem:[#allocation3 + $0x54] ss:$8 sps:$4 sm:$0xff]  }
  0x35   :  { %v2021_v11 = vld [vmem:[#allocation3 + $0x50] ss:$8 sps:$4 sm:$0xff]   ;;  %v2022_v12 = vld [vmem:[#allocation3 + $0x64] ss:$8 sps:$4 sm:$0xff]   ;;  %v2024_v13 = vld [vmem:[#allocation3 + $0x60] ss:$8 sps:$4 sm:$0xff]  }
  0x36   :  { %s2537_s26 = sld [smem:[#allocation12_spill]]  ;;  %v2025_v15 = vld [vmem:[#allocation3 + $0x74] ss:$8 sps:$4 sm:$0xff]   ;;  %v2052_v17 = vld [vmem:[#allocation6 + $0x40] sm:$0xff]   ;;  %v2054_v19 = vld [vmem:[#allocation6 + $0x48] sm:$0xff]   ;;  %v2188_v52 = vmov 0.0  }
  0x37   :  { %288 = vmatpush1.bf16.msra.mxu0 %v2009_v3  ;;  %v2053_v18 = vld [vmem:[#allocation6] sm:$0xff]   ;;  %v2027_v20 = vld [vmem:[#allocation3 + $0x70] ss:$8 sps:$4 sm:$0xff]   ;;  %1829 = vmatprep.subr.bf16.mxu1 %v2052_v17  ;;  %v2055_v21 = vld [vmem:[#allocation6 + $0x8] sm:$0xff]   ;;  %v329_v54 = vshrl.u32 %v328_v53, 7  ;;  %s2538_s1 = sld [smem:[#allocation14_spill]] }
  0x38   :  { %289 = vmatprep.subr.bf16.mxu0 %v2010_v4  ;;  %1830 = vmatpush3.bf16.msra.mxu1 %v2053_v18  ;;  %v2056_v22 = vld [vmem:[#allocation6 + $0x50] sm:$0xff]   ;;  %v2028_v23 = vld [vmem:[#allocation3 + $0x84] ss:$8 sps:$4 sm:$0xff]   ;;  %v2030_v24 = vld [vmem:[#allocation3 + $0x80] ss:$8 sps:$4 sm:$0xff]   ;;  %vm2189_vm0 = vmmov 0  }
  0x39   :  { %1831 = vmatprep.subr.bf16.mxu1 %v2054_v19  ;;  %v2031_v25 = vld [vmem:[#allocation3 + $0x94] ss:$8 sps:$4 sm:$0xff]   ;;  %v2033_v29 = vld [vmem:[#allocation3 + $0x90] ss:$8 sps:$4 sm:$0xff]   ;;  %v2060_v30 = vld [vmem:[#allocation6 + $0x60] sm:$0xff]   ;;  %v330_v55 = vsub.s32 0, %v329_v54 }
  0x3a   :  { %v2057_v26 = vld [vmem:[#allocation6 + $0x10] sm:$0xff]   ;;  %v2058_v27 = vld [vmem:[#allocation6 + $0x58] sm:$0xff]   ;;  %v2034_v31 = vld [vmem:[#allocation3 + $0xa4] ss:$8 sps:$4 sm:$0xff]   ;;  %v334_v57 = vsub.s32 1, %v329_v54  ;;  %vm665_vm1 = vcmask 261120  }
  0x3b   :  { %290 = vmatpush1.bf16.msra.mxu0 %v2012_v5  ;;  %v2059_v28 = vld [vmem:[#allocation6 + $0x18] sm:$0xff]   ;;  %v2061_v32 = vld [vmem:[#allocation6 + $0x20] sm:$0xff]   ;;  %v2062_v34 = vld [vmem:[#allocation6 + $0x68] sm:$0xff]   ;;  %s2192_s27 = smov 32   ;;  %vm757_vm2 = vcmask 130048   ;;  %vm963_vm3 = vcmask 1043456  }
  0x3c   :  { %291 = vmatprep.subr.bf16.mxu0 %v2013_v6  ;;  %v90_v14 = vld [vmem:[%s2537_s26 + $0x8] sm:$0xff]  ;;  %1832 = vmatpush3.bf16.msra.mxu1 %v2055_v21  ;;  %v2036_v33 = vld [vmem:[#allocation3 + $0xa0] ss:$8 sps:$4 sm:$0xff]   ;;  %v2040_v37 = vld [vmem:[#allocation3 + $0xc4] ss:$8 sps:$4 sm:$0xff]   ;;  %vm959_vm4 = vcmask 64512  }
  0x3d   :  { %v92_v16 = vpack.c.bf16 %v90_v14, %v90_v14  ;;  %1833 = vmatprep.subr.bf16.mxu1 %v2056_v22  ;;  %v2037_v35 = vld [vmem:[#allocation3 + $0xb4] ss:$8 sps:$4 sm:$0xff]   ;;  %v2039_v36 = vld [vmem:[#allocation3 + $0xb0] ss:$8 sps:$4 sm:$0xff]   ;;  %v2042_v38 = vld [vmem:[#allocation3 + $0xc0] ss:$8 sps:$4 sm:$0xff]  }
  0x3e   :  { %v2043_v39 = vld [vmem:[#allocation3 + $0xd4] ss:$8 sps:$4 sm:$0xff]   ;;  %v2045_v40 = vld [vmem:[#allocation3 + $0xd0] ss:$8 sps:$4 sm:$0xff]   ;;  %v2046_v41 = vld [vmem:[#allocation3 + $0xe4] ss:$8 sps:$4 sm:$0xff]  }
  0x3f   :  { %292 = vmatpush1.bf16.msra.mxu0 %v2015_v7  ;;  %317 = vmatprep.mubr.bf16.mxu0 %v92_v16  ;;  %v2048_v42 = vld [vmem:[#allocation3 + $0xe0] ss:$8 sps:$4 sm:$0xff]   ;;  %v2049_v43 = vld [vmem:[#allocation3 + $0xf4] ss:$8 sps:$4 sm:$0xff]   ;;  %v2051_v44 = vld [vmem:[#allocation3 + $0xf0] ss:$8 sps:$4 sm:$0xff]  }
  0x40   :  { %293 = vmatprep.subr.bf16.mxu0 %v2016_v8  ;;  %1834 = vmatpush3.bf16.msra.mxu1 %v2057_v26  ;;  %v89_v45 = vld [vmem:[%s2537_s26] sm:$0xff]  ;;  %v2063_v47 = vld [vmem:[#allocation6 + $0x28] sm:$0xff]   ;;  %v2066_v50 = vld [vmem:[#allocation6 + $0x78] sm:$0xff]   ;;  %s2197_s2 = smov 24   ;;  %vm1725_vm5 = vcmask 195584  }
  0x41   :  { %1835 = vmatprep.subr.bf16.mxu1 %v2058_v27  ;;  %v91_v46 = vpack.c.bf16 %v89_v45, %v89_v45  ;;  %v2064_v48 = vld [vmem:[#allocation6 + $0x70] sm:$0xff]   ;;  %v2067_v51 = vld [vmem:[#allocation6 + $0x38] sm:$0xff]   ;;  %v2071_v14 = vld [vmem:[%s2517_s7 + $0x18] sm:$0xff]  }
  0x42   :  { %v2065_v49 = vld [vmem:[#allocation6 + $0x30] sm:$0xff]   ;;  %v2073_v16 = vld [vmem:[%s2517_s7 + $0x28] sm:$0xff]   ;;  %v2074_v17 = vld [vmem:[%s2517_s7 + $0x30] sm:$0xff]  }
  0x43   :  { %294 = vmatpush1.bf16.msra.mxu0 %v2018_v9  ;;  %v326_v56 = vld [vmem:[%s2538_s1] sm:$0x3]  ;;  %v2075_v18 = vld [vmem:[%s2517_s7 + $0x38] sm:$0xff]  }
  0x44   :  { %295 = vmatprep.subr.bf16.mxu0 %v2019_v10  ;;  %1836 = vmatpush3.bf16.msra.mxu1 %v2059_v28  ;;  %v340_v58 = vld [vmem:[%s2513_s3] sm:$0x3]  ;;  %v331_v59 = vrot.slane %v326_v56, %v330_v55  ;;  %v335_v60 = vrot.slane %v326_v56, %v334_v57 }
  0x45   :  { %1837 = vmatprep.subr.bf16.mxu1 %v2060_v30  ;;  %v345_v61 = vrot.slane %v340_v58, %v330_v55  ;;  %v349_v63 = vrot.slane %v340_v58, %v334_v57  ;;  %v2068_v10 = vld [vmem:[%s2517_s7] sm:$0xff]  }
  0x46   :  { %v1792_v21 = vld [vmem:[%s2515_s5] ss:$0 sm:$0xff] }
  0x47   :  { %296 = vmatpush1.bf16.msra.mxu0 %v2021_v11  ;;  %v2076_v30 = vld [vmem:[%s2522_s12] sm:$0xff]  }
  0x48   :  { %297 = vmatprep.subr.bf16.mxu0 %v2022_v12  ;;  %1838 = vmatpush3.bf16.msra.mxu1 %v2061_v32  ;;  %v2069_v12 = vld [vmem:[%s2517_s7 + $0x8] sm:$0xff]   ;;  %v2077_v32 = vld [vmem:[%s2520_s10] sm:$0xff]  }
  0x49   :  { %1839 = vmatprep.subr.bf16.mxu1 %v2062_v34  ;;  %v1802_v34 = vld [vmem:[%s2518_s8] ss:$0 sm:$0xff] }
  0x4a   :  { %v1804_v54 = vld [vmem:[%s2521_s11] ss:$0 sm:$0xff]  ;;  %s2193_s11 = smov 112  }
  0x4b   :  { %298 = vmatpush1.bf16.msra.mxu0 %v2024_v13  ;;  %v2070_v13 = vld [vmem:[%s2517_s7 + $0x10] sm:$0xff]  }
  0x4c   :  { %299 = vmatprep.subr.bf16.mxu0 %v2025_v15  ;;  %1840 = vmatpush3.bf16.msra.mxu1 %v2063_v47  ;;  %v2072_v15 = vld [vmem:[%s2517_s7 + $0x20] sm:$0xff]   ;;  %s2198_s7 = smov [#allocation8]  }
  0x4d   :  { %1841 = vmatprep.subr.bf16.mxu1 %v2064_v48  ;;  %s1734_s3 = sshll.u32 %s2198_s7, 4  ;;  %s1735_s3 = int_to_ptr.vmem [resolvable:$true] %s1734_s3 }
  0x4e   :  { %p2159_p3 = scmp.lt.s32.totalorder %s1735_s3, %s1735_s3 }
  0x4f   :  { %300 = vmatpush1.bf16.msra.mxu0 %v2027_v20 }
  0x50   :  { %301 = vmatprep.subr.bf16.mxu0 %v2028_v23  ;;  %1842 = vmatpush3.bf16.msra.mxu1 %v2065_v49 }
  0x51   :  { %1843 = vmatprep.subr.bf16.mxu1 %v2066_v50 }
  0x53   :  { %302 = vmatpush1.bf16.msra.mxu0 %v2030_v24  ;;  %v1793_v24 = vld [vmem:[%s2516_s6] ss:$0 sm:$0xff] }
  0x54   :  { %303 = vmatprep.subr.bf16.mxu0 %v2031_v25  ;;  %1844 = vmatpush3.bf16.msra.mxu1 %v2067_v51 }
  0x55   :  { %1889 = vmatprep.subr.bf16.mxu1 %v2188_v52 }
  0x57   :  { %304 = vmatpush1.bf16.msra.mxu0 %v2033_v29 }
  0x58   :  { %305 = vmatprep.subr.bf16.mxu0 %v2034_v31  ;;  %v2190_v31 = vmov 0  }
  0x5b   :  { %306 = vmatpush1.bf16.msra.mxu0 %v2036_v33  ;;  %v2078_v33 = vld [vmem:[%s2520_s10 + $0x8] sm:$0xff]   ;;  %s2191_s10 = smov 96  }
  0x5c   :  { %307 = vmatprep.subr.bf16.mxu0 %v2037_v35 }
  0x5f   :  { %308 = vmatpush1.bf16.msra.mxu0 %v2039_v36  ;;  %v1803_v36 = vld [vmem:[%s2519_s9] ss:$0 sm:$0xff] }
  0x60   :  { %309 = vmatprep.subr.bf16.mxu0 %v2040_v37 }
  0x63   :  { %310 = vmatpush1.bf16.msra.mxu0 %v2042_v38 }
  0x64   :  { %311 = vmatprep.subr.bf16.mxu0 %v2043_v39 }
  0x67   :  { %312 = vmatpush1.bf16.msra.mxu0 %v2045_v40 }
  0x68   :  { %313 = vmatprep.subr.bf16.mxu0 %v2046_v41 }
  0x6b   :  { %314 = vmatpush1.bf16.msra.mxu0 %v2048_v42 }
  0x6c   :  { %315 = vmatprep.subr.bf16.mxu0 %v2049_v43  ;;  %v1808_v43 = vld [vmem:[%s2523_s13] ss:$0 sm:$0xff] }
  0x6f   :  { %316 = vmatpush1.bf16.msra.mxu0 %v2051_v44 }
  0x70   :  { %1909 = vmatprep.subr.bf16.mxu0 %v2188_v52 }
  0x72   :  { %318 = vmatmul.mubr.bf16.vlgmr.msra.gmra.mrb[0].mxu0 %v91_v46 }
  0x73   :  { %1913 = vmatprep.mubr.msk.bf16.mxu0 %vm2189_vm0, %v2188_v52  ;;  %1910 = vmatpush3.bf16.msra.mxu0 %v2077_v32 }
  0x74   :  { %1911 = vmatprep.subr.bf16.mxu0 %v2188_v52 }
  0x77   :  { %1912 = vmatpush3.bf16.msra.mxu0 %v2078_v33 }
  0x78   :  { %1923 = vmatprep.subr.bf16.mxu0 %v2188_v52 }
 0x145   :  { %v319_v62 = vpop.f32.mrb[0].mxu0 }
 0x146   :  { %v338_v0 = vmul.f32 %v331_v59, %v319_v62  ;;  %v321_v1 = vpop.f32.mrb[1].mxu0 }
 0x147   :  { %v339_v2 = vmul.f32 %v335_v60, %v321_v1  ;;  %v323_v3 = vpop.f32.mrb[2].mxu0 }
 0x148   :  { %v352_v4 = vadd.f32 %v345_v61, %v338_v0  ;;  %v324_v5 = vpop.f32.mrb[3].mxu0 }
 0x149   :  { %v353_v6 = vadd.f32 %v349_v63, %v339_v2 }
 0x14a   :  { %v354_v7 = vmax.f32 %v352_v4, 0.0 }
 0x14b   :  { %v355_v8 = vmax.f32 %v353_v6, 0.0 }
 0x14c   :  { %v356_v11 = vpack.c.bf16 %v354_v7, %v354_v7 }
 0x14d   :  { %v357_v9 = vpack.c.bf16 %v355_v8, %v355_v8 }
 0x14f   :  { %518 = vmatprep.mubr.bf16.mxu1 %v357_v9 }
 0x150   :  { %519 = vmatmul.mubr.bf16.vlgmr.msra.gmra.mrb[0].mxu1 %v356_v11 }
 0x151   :  { %1890 = vmatpush3.bf16.msra.mxu1 %v2068_v10  ;;  %1905 = vmatprep.mubr.msk.bf16.mxu1 %vm2189_vm0, %v2188_v52 }
 0x152   :  { %1891 = vmatprep.subr.bf16.mxu1 %v2188_v52 }
 0x155   :  { %1892 = vmatpush3.bf16.msra.mxu1 %v2069_v12 }
 0x156   :  { %1893 = vmatprep.subr.bf16.mxu1 %v2188_v52 }
 0x159   :  { %1894 = vmatpush3.bf16.msra.mxu1 %v2070_v13 }
 0x15a   :  { %1895 = vmatprep.subr.bf16.mxu1 %v2188_v52 }
 0x15d   :  { %1896 = vmatpush3.bf16.msra.mxu1 %v2071_v14 }
 0x15e   :  { %1897 = vmatprep.subr.bf16.mxu1 %v2188_v52 }
 0x161   :  { %1898 = vmatpush3.bf16.msra.mxu1 %v2072_v15 }
 0x162   :  { %1899 = vmatprep.subr.bf16.mxu1 %v2188_v52 }
 0x165   :  { %1900 = vmatpush3.bf16.msra.mxu1 %v2073_v16 }
 0x166   :  { %1901 = vmatprep.subr.bf16.mxu1 %v2188_v52 }
 0x169   :  { %1902 = vmatpush3.bf16.msra.mxu1 %v2074_v17 }
 0x16a   :  { %1903 = vmatprep.subr.bf16.mxu1 %v2188_v52 }
 0x16d   :  { %1904 = vmatpush3.bf16.msra.mxu1 %v2075_v18 }
 0x16e   :  { %1917 = vmatprep.subr.bf16.mxu1 %v2188_v52 }
 0x223   :  { %v1845_v19 = vpop.f32.mrb[0].mxu1 }
 0x224   :  { %v1846_v20 = vpop.f32.mrb[1].mxu1 }
 0x225   :  { %v1847_v22 = vadd.f32 %v1846_v20, %v1845_v19  ;;  %v1848_v23 = vpop.f32.mrb[2].mxu1 }
 0x226   :  { %v1849_v25 = vpop.f32.mrb[3].mxu1 }
 0x227   :  { %v533_v26 = vmul.f32 %v1847_v22, %v1792_v21 }
 0x229   :  { %v541_v27 = vadd.f32 %v1793_v24, %v533_v26 }
 0x22b   :  { %v542_v28 = vmax.f32 %v541_v27, 0.0 }
 0x22d   :  { %v543_v29 = vpack.c.bf16 %v542_v28, %v542_v28  ;;  %v958_v28 = vld [vmem:[%s2526_s16] sm:$0xf] }
 0x22f   :  { %1906 = vmatmul.mubr.bf16.vlgmr.msra.gmra.mrb[4].mxu1 %v543_v29  ;;  %v900_v29 = vld [vmem:[%s2524_s14] sm:$0xff]  ;;  %s2194_s14 = smov 120  }
 0x230   :  { %1919 = vmatprep.mubr.msk.bf16.mxu1 %vm2189_vm0, %v2188_v52  ;;  %1918 = vmatpush3.bf16.msra.mxu1 %v2076_v30 }
 0x231   :  { %1929 = vmatprep.subr.bf16.mxu1 %v2188_v52 }
 0x237   :  { %1920 = vmatmul.mubr.bf16.vlgmr.msra.gmra.mrb[8].mxu1 %v2190_v31  ;;  %v965_v31 = vsel %vm963_vm3, %v958_v28, 0 }
 0x238   :  { %1931 = vmatprep.mubr.msk.bf16.mxu1 %vm2189_vm0, %v2188_v52 }
 0x302   :  { %v642_v35 = vpop.f32.mrb[4].mxu1 }
 0x303   :  { %v655_v37 = vmul.f32 %v1802_v34, %v642_v35  ;;  %v1907_v38 = vpop.f32.mrb[5].mxu1 }
 0x304   :  { %v645_v39 = vpop.f32.mrb[6].mxu1 }
 0x305   :  { %v1908_v40 = vpop.f32.mrb[7].mxu1  ;;  %v663_v41 = vadd.f32 %v1803_v36, %v655_v37 }
 0x307   :  { %v664_v42 = vmax.f32 %v663_v41, 0.0 }
 0x309   :  { %668 = vrot.lane.b32.xlu0 %v664_v42, %s2191_s10  ;;  %666 = vst.msk [vmem:[#allocation2] sm:$0xff] %vm665_vm1, %v664_v42 }
 0x30a   :  { %v795_v44 = vpop.f32.mrb[8].mxu1 }
 0x30b   :  { %v796_v45 = vadd.f32 %v1808_v43, %v795_v44  ;;  %v1921_v46 = vpop.f32.mrb[9].mxu1 }
 0x30c   :  { %v798_v47 = vpop.f32.mrb[10].mxu1 }
 0x30d   :  { %v1922_v48 = vpop.f32.mrb[11].mxu1  ;;  %809 = vrot.lane.b32.xlu0 %v796_v45, %s2191_s10 }
 0x310   :  { %v672_v50 = vld [vmem:[#allocation2] sm:$0xff] }
 0x37b   :  { %v669_v49 = vpop.permute.xlu0 %668 }
 0x37c   :  { %671 = vst.msk [vmem:[#allocation2 + $0x8] sm:$0xff] %vm665_vm1, %v669_v49 }
 0x37f   :  { %v810_v1 = vpop.permute.xlu0 %809 }
 0x383   :  { %v673_v51 = vld [vmem:[#allocation2 + $0x8] sm:$0xff] }
 0x384   :  { %v674_v53 = vpack.c.bf16 %v673_v51, %v672_v50  ;;  %v1007_v51 = vld [vmem:[%s2527_s17] sm:$0xf]  ;;  %s2196_s17 = smov 16  }
 0x386   :  { %1914 = vmatmul.mubr.msk.bf16.vlgmr.msra.gmra.mrb[4].mxu0 %vm665_vm1, %v674_v53  ;;  %v1009_v53 = vsel %vm963_vm3, %v1007_v51, 0 }
 0x387   :  { %1924 = vmatpush3.bf16.msra.mxu0 %v2076_v30  ;;  %1925 = vmatprep.mubr.msk.bf16.mxu0 %vm2189_vm0, %v2188_v52  ;;  %v2079_v30 = vld [vmem:[%s2525_s15] sm:$0xff]   ;;  %s2195_s15 = smov 104  }
 0x388   :  { %1935 = vmatprep.subr.bf16.mxu0 %v2188_v52  ;;  %1930 = vmatpush3.bf16.msra.mxu1 %v2079_v30 }
 0x389   :  { %1941 = vmatprep.subr.bf16.mxu1 %v2188_v52 }
 0x459   :  { %v735_v55 = vpop.f32.mrb[4].mxu0 }
 0x45a   :  { %v736_v56 = vadd.f32 %v1804_v54, %v735_v55  ;;  %v1915_v57 = vpop.f32.mrb[5].mxu0 }
 0x45b   :  { %v738_v58 = vpop.f32.mrb[6].mxu0 }
 0x45c   :  { %v801_v59 = vadd.f32 %v796_v45, %v736_v56  ;;  %v739_v60 = vadd.f32 %v1804_v54, %v738_v58  ;;  %v1916_v61 = vpop.f32.mrb[7].mxu0 }
 0x45e   :  { %v1810_v62 = vmul.f32 -1.442695, %v801_v59 }
 0x460   :  { %2080 = vpow2.f32 %v1810_v62 }
 0x46a   :  { %v2081_v63 = vpop.eup %2080 }
 0x46b   :  { %v805_v0 = vadd.f32 1.0, %v2081_v63 }
 0x46d   :  { %2082 = vrcp.f32 %v805_v0 }
 0x477   :  { %v2083_v2 = vpop.eup %2082 }
 0x478   :  { %v812_v3 = vmul.f32 %v2083_v2, %v810_v1  ;;  %v819_v7 = vsub.f32 1.0, %v2083_v2  ;;  %v825_v9 = vmul.f32 0.0, %v2083_v2 }
 0x47a   :  { %814 = vrot.lane.b32.xlu1 %v812_v3, %s2192_s27 }
 0x4ec   :  { %v815_v4 = vpop.permute.xlu1 %814 }
 0x4ed   :  { %v817_v5 = vadd.f32 %v815_v4, %v736_v56 }
 0x4ef   :  { %2084 = vtanh.f32 %v817_v5 }
 0x4f9   :  { %v2085_v6 = vpop.eup %2084 }
 0x4fa   :  { %821 = vrot.lane.b32.xlu1 %v2085_v6, %s2193_s11 }
 0x56c   :  { %v822_v8 = vpop.permute.xlu1 %821 }
 0x56d   :  { %v824_v10 = vmul.f32 %v822_v8, %v819_v7 }
 0x56f   :  { %v826_v11 = vadd.f32 %v825_v9, %v824_v10 }
 0x571   :  { %v827_v12 = vpack.c.bf16 %v826_v11, %v826_v11 }
 0x573   :  { %829 = vrot.lane.b32.xlu0 %v827_v12, %s2193_s11 }
 0x5e5   :  { %v830_v13 = vpop.permute.xlu0 %829 }
 0x5e6   :  { %1926 = vmatmul.mubr.msk.bf16.vlgmr.msra.gmra.mrb[8].mxu0 %vm757_vm2, %v830_v13 }
 0x5e7   :  { %1937 = vmatprep.mubr.msk.bf16.mxu0 %vm2189_vm0, %v2188_v52  ;;  %1936 = vmatpush3.bf16.msra.mxu0 %v965_v31 }
 0x5e8   :  { %1947 = vmatprep.subr.mxu0 %v2188_v52 }
 0x6b9   :  { %v868_v14 = vpop.f32.mrb[8].mxu0 }
 0x6ba   :  { %v869_v15 = vadd.f32 %v1808_v43, %v868_v14  ;;  %v1927_v16 = vpop.f32.mrb[9].mxu0 }
 0x6bb   :  { %v871_v17 = vpop.f32.mrb[10].mxu0 }
 0x6bc   :  { %882 = vrot.lane.b32.xlu1 %v869_v15, %s2191_s10  ;;  %v1928_v18 = vpop.f32.mrb[11].mxu0  ;;  %v874_v19 = vadd.f32 %v869_v15, %v739_v60 }
 0x6be   :  { %v1812_v20 = vmul.f32 -1.442695, %v874_v19 }
 0x6c0   :  { %2086 = vpow2.f32 %v1812_v20 }
 0x6ca   :  { %v2087_v21 = vpop.eup %2086 }
 0x6cb   :  { %v878_v22 = vadd.f32 1.0, %v2087_v21 }
 0x6cd   :  { %2088 = vrcp.f32 %v878_v22 }
 0x6d7   :  { %v2089_v23 = vpop.eup %2088 }
 0x6d8   :  { %v892_v35 = vsub.f32 1.0, %v2089_v23  ;;  %v898_v37 = vmul.f32 %v2089_v23, %v826_v11 }
 0x72e   :  { %v883_v24 = vpop.permute.xlu1 %882 }
 0x72f   :  { %v885_v25 = vmul.f32 %v2089_v23, %v883_v24 }
 0x731   :  { %887 = vrot.lane.b32.xlu0 %v885_v25, %s2192_s27 }
 0x7a3   :  { %v888_v26 = vpop.permute.xlu0 %887 }
 0x7a4   :  { %v890_v27 = vadd.f32 %v888_v26, %v739_v60 }
 0x7a6   :  { %2090 = vtanh.f32 %v890_v27 }
 0x7a7   :  { %2092 = vtanh.f32 %v900_v29 }
 0x7b0   :  { %v2091_v32 = vpop.eup %2090 }
 0x7b1   :  { %894 = vrot.lane.b32.xlu1 %v2091_v32, %s2193_s11  ;;  %v2093_v33 = vpop.eup %2092 }
 0x7b2   :  { %v902_v34 = vpack.c.bf16 %v2093_v33, %v2093_v33 }
 0x7b4   :  { %1938 = vmatmul.mubr.msk.bf16.vlgmr.msra.gmra.mrb[12].mxu0 %vm959_vm4, %v902_v34 }
 0x7b5   :  { %1949 = vmatprep.mubr.msk.f32.mxu0 %vm2189_vm0, %v2188_v52 }
 0x823   :  { %v895_v36 = vpop.permute.xlu1 %894 }
 0x824   :  { %v897_v38 = vmul.f32 %v895_v36, %v892_v35 }
 0x826   :  { %v899_v39 = vadd.f32 %v898_v37, %v897_v38 }
 0x828   :  { %v903_v40 = vpack.c.bf16 %v899_v39, %v899_v39 }
 0x82a   :  { %907 = vrot.lane.b32.xlu0 %v903_v40, %s2193_s11 }
 0x887   :  { %v1001_v41 = vpop.f32.mrb[12].mxu0 }
 0x888   :  { %1214 = vrot.lane.b32.xlu1 %v1001_v41, %s2194_s14  ;;  %v1939_v42 = vpop.f32.mrb[13].mxu0  ;;  %1948 = vmatpush3.xpose.msk.msra.mxu0 %vm959_vm4, %v1001_v41 }
 0x889   :  { %v1004_v43 = vpop.f32.mrb[14].mxu0  ;;  %1957 = vmatprep.subr.mxu0 %v2188_v52 }
 0x88a   :  { %v1940_v44 = vpop.f32.mrb[15].mxu0 }
 0x88c   :  { %1381 = vrot.lane.b32.xlu1 %v1001_v41, %s2193_s11 }
 0x890   :  { %1547 = vrot.lane.b32.xlu1 %v1001_v41, %s2195_s15 }
 0x89c   :  { %v908_v45 = vpop.permute.xlu0 %907 }
 0x89d   :  { %1932 = vmatmul.mubr.msk.bf16.vlgmr.msra.gmra.mrb[12].mxu1 %vm757_vm2, %v908_v45 }
 0x89e   :  { %1943 = vmatprep.mubr.msk.bf16.mxu1 %vm2189_vm0, %v2188_v52  ;;  %1942 = vmatpush3.bf16.msra.mxu1 %v1009_v53 }
 0x89f   :  { %1952 = vmatprep.subr.mxu1 %v2188_v52 }
 0x8a5   :  { %1944 = vmatmul.mubr.msk.bf16.vlgmr.msra.gmra.mrb[16].mxu1 %vm959_vm4, %v902_v34 }
 0x8a6   :  { %1954 = vmatprep.mubr.msk.f32.mxu1 %vm2189_vm0, %v2188_v52 }
 0x8fa   :  { %v1215_v48 = vpop.permute.xlu1 %1214 }
 0x8fe   :  { %v1382_v54 = vpop.permute.xlu1 %1381 }
 0x902   :  { %v1548_v57 = vpop.permute.xlu1 %1547 }
 0x970   :  { %v952_v46 = vpop.f32.mrb[12].mxu1 }
 0x971   :  { %1212 = vrot.lane.b32.xlu0 %v952_v46, %s2194_s14  ;;  %v1933_v47 = vpop.f32.mrb[13].mxu1  ;;  %1950 = vmatmul.mubr.msk.f32.vlgmr.msra.gmra.mrb[16].mxu0 %vm959_vm4, %v952_v46 }
 0x972   :  { %v955_v49 = vpop.f32.mrb[14].mxu1  ;;  %1958 = vmatpush3.xpose.msk.msra.mxu0 %vm959_vm4, %v1215_v48  ;;  %1959 = vmatprep.mubr.msk.f32.mxu0 %vm2189_vm0, %v2188_v52 }
 0x973   :  { %v1934_v50 = vpop.f32.mrb[15].mxu1  ;;  %1967 = vmatprep.subr.mxu0 %v2188_v52 }
 0x975   :  { %1379 = vrot.lane.b32.xlu0 %v952_v46, %s2193_s11 }
 0x978   :  { %v1045_v14 = vpop.f32.mrb[16].mxu1 }
 0x979   :  { %1545 = vrot.lane.b32.xlu0 %v952_v46, %s2195_s15  ;;  %v1945_v15 = vpop.f32.mrb[17].mxu1  ;;  %1953 = vmatpush3.msra.mxu1 %v1045_v14 }
 0x97a   :  { %v1048_v16 = vpop.f32.mrb[18].mxu1  ;;  %1962 = vmatprep.subr.mxu1 %v2188_v52 }
 0x97b   :  { %v1946_v17 = vpop.f32.mrb[19].mxu1 }
 0x9e3   :  { %v1213_v55 = vpop.permute.xlu0 %1212 }
 0x9e4   :  { %1960 = vmatmul.mubr.msk.f32.vlgmr.msra.gmra.mrb[18].mxu0 %vm959_vm4, %v1213_v55 }
 0x9e5   :  { %1968 = vmatpush3.xpose.msk.msra.mxu0 %vm959_vm4, %v1382_v54  ;;  %1969 = vmatprep.mubr.msk.f32.mxu0 %vm2189_vm0, %v2188_v52 }
 0x9e6   :  { %1977 = vmatprep.subr.mxu0 %v2188_v52 }
 0x9e7   :  { %v1380_v56 = vpop.permute.xlu0 %1379 }
 0x9e8   :  { %1970 = vmatmul.mubr.msk.f32.vlgmr.msra.gmra.mrb[20].mxu0 %vm959_vm4, %v1380_v56 }
 0x9e9   :  { %1978 = vmatpush3.xpose.msk.msra.mxu0 %vm959_vm4, %v1548_v57  ;;  %1979 = vmatprep.mubr.msk.f32.mxu0 %vm2189_vm0, %v2188_v52 }
 0x9eb   :  { %v1546_v58 = vpop.permute.xlu0 %1545 }
 0x9ec   :  { %1980 = vmatmul.mubr.msk.f32.vlgmr.msra.gmra.mrb[22].mxu0 %vm959_vm4, %v1546_v58 }
 0xa44   :  { %v1123_v59 = vpop.f32.mrb[16].mxu0 }
 0xa45   :  { %v1127_v60 = vmul.f32 0.35355338, %v1123_v59  ;;  %v1951_v61 = vpop.f32.mrb[17].mxu0 }
 0xa47   :  { %v1128_v62 = vsel %vm959_vm4, %v1127_v60, -inf }
 0xa48   :  { %1129 = vmax.xlane.f32.xlu1 %v1128_v62 }
 0xab7   :  { %v1286_v63 = vpop.f32.mrb[18].mxu0 }
 0xab8   :  { %v1290_v0 = vmul.f32 0.35355338, %v1286_v63  ;;  %v1961_v1 = vpop.f32.mrb[19].mxu0 }
 0xaba   :  { %v1291_v2 = vsel %vm959_vm4, %v1290_v0, -inf }
 0xabb   :  { %1292 = vmax.xlane.f32.xlu0 %v1291_v2  ;;  %v1453_v3 = vpop.f32.mrb[20].mxu0 }
 0xabc   :  { %v1457_v4 = vmul.f32 0.35355338, %v1453_v3  ;;  %v1971_v5 = vpop.f32.mrb[21].mxu0 }
 0xabe   :  { %v1458_v6 = vsel %vm959_vm4, %v1457_v4, -inf }
 0xabf   :  { %1459 = vmax.xlane.f32.xlu0 %v1458_v6  ;;  %v1619_v7 = vpop.f32.mrb[22].mxu0 }
 0xac0   :  { %v1623_v8 = vmul.f32 0.35355338, %v1619_v7  ;;  %v1981_v9 = vpop.f32.mrb[23].mxu0 }
 0xac2   :  { %v1624_v10 = vsel %vm959_vm4, %v1623_v8, -inf }
 0xac3   :  { %1625 = vmax.xlane.f32.xlu1 %v1624_v10 }
 0xad5   :  { %v1130_v11 = vpop.xlane.xlu1 %1129 }
 0xad6   :  { %v1131_v12 = vsub.f32 %v1127_v60, %v1130_v11 }
 0xad8   :  { %v1132_v13 = vmul.f32 1.442695, %v1131_v12 }
 0xada   :  { %2094 = vpow2.f32 %v1132_v13 }
 0xae4   :  { %v2095_v18 = vpop.eup %2094 }
 0xae5   :  { %v1134_v19 = vsel %vm959_vm4, %v2095_v18, 0.0 }
 0xae6   :  { %1135 = vadd.xlane.f32.xlu0 %v1134_v19 }
 0xb48   :  { %v1293_v20 = vpop.xlane.xlu0 %1292 }
 0xb49   :  { %v1294_v21 = vsub.f32 %v1290_v0, %v1293_v20 }
 0xb4b   :  { %v1295_v22 = vmul.f32 1.442695, %v1294_v21 }
 0xb4c   :  { %v1460_v23 = vpop.xlane.xlu0 %1459 }
 0xb4d   :  { %2096 = vpow2.f32 %v1295_v22  ;;  %v1461_v24 = vsub.f32 %v1457_v4, %v1460_v23 }
 0xb4f   :  { %v1462_v25 = vmul.f32 1.442695, %v1461_v24 }
 0xb50   :  { %v1626_v31 = vpop.xlane.xlu1 %1625 }
 0xb51   :  { %2098 = vpow2.f32 %v1462_v25  ;;  %v1627_v32 = vsub.f32 %v1623_v8, %v1626_v31 }
 0xb53   :  { %v1628_v33 = vmul.f32 1.442695, %v1627_v32 }
 0xb57   :  { %v2097_v26 = vpop.eup %2096 }
 0xb58   :  { %v1297_v27 = vsel %vm959_vm4, %v2097_v26, 0.0 }
 0xb59   :  { %1298 = vadd.xlane.f32.xlu1 %v1297_v27 }
 0xb5b   :  { %v2099_v28 = vpop.eup %2098 }
 0xb5c   :  { %v1464_v29 = vsel %vm959_vm4, %v2099_v28, 0.0 }
 0xb5d   :  { %1465 = vadd.xlane.f32.xlu0 %v1464_v29 }
 0xb6a   :  { %1469 = vrot.lane.b32.xlu1 %v1045_v14, %s2193_s11 }
 0xb73   :  { %1303 = vrot.lane.b32.xlu0 %v1045_v14, %s2194_s14  ;;  %v1136_v30 = vpop.xlane.xlu0 %1135 }
 0xb74   :  { %2100 = vrcp.f32 %v1136_v30 }
 0xb75   :  { %2102 = vpow2.f32 %v1628_v33 }
 0xb7e   :  { %v2101_v34 = vpop.eup %2100 }
 0xb7f   :  { %v1138_v35 = vmul.f32 %v2101_v34, %v2095_v18  ;;  %v2103_v36 = vpop.eup %2102 }
 0xb80   :  { %v1630_v37 = vsel %vm959_vm4, %v2103_v36, 0.0 }
 0xb81   :  { %1955 = vmatmul.mubr.msk.f32.vlgmr.msra.gmra.mrb[20].mxu1 %vm959_vm4, %v1138_v35 }
 0xb82   :  { %1964 = vmatprep.mubr.msk.f32.mxu1 %vm2189_vm0, %v2188_v52 }
 0xb8e   :  { %1631 = vadd.xlane.f32.xlu1 %v1630_v37 }
 0xb9f   :  { %1635 = vrot.lane.b32.xlu1 %v1045_v14, %s2195_s15 }
 0xbe6   :  { %v1299_v38 = vpop.xlane.xlu1 %1298 }
 0xbe7   :  { %2104 = vrcp.f32 %v1299_v38 }
 0xbea   :  { %v1466_v39 = vpop.xlane.xlu0 %1465  ;;  %v1470_v43 = vpop.permute.xlu1 %1469 }
 0xbeb   :  { %2106 = vrcp.f32 %v1466_v39 }
 0xbee   :  { %v1304_v40 = vpop.permute.xlu0 %1303 }
 0xbef   :  { %1963 = vmatpush3.msra.mxu1 %v1304_v40 }
 0xbf0   :  { %1972 = vmatprep.subr.mxu1 %v2188_v52 }
 0xbf1   :  { %v2105_v41 = vpop.eup %2104 }
 0xbf2   :  { %v1301_v42 = vmul.f32 %v2105_v41, %v2097_v26 }
 0xbf4   :  { %1965 = vmatmul.mubr.msk.f32.vlgmr.msra.gmra.mrb[22].mxu1 %vm959_vm4, %v1301_v42 }
 0xbf5   :  { %v2107_v44 = vpop.eup %2106  ;;  %1973 = vmatpush3.msra.mxu1 %v1470_v43  ;;  %1974 = vmatprep.mubr.msk.f32.mxu1 %vm2189_vm0, %v2188_v52 }
 0xbf6   :  { %v1468_v45 = vmul.f32 %v2107_v44, %v2099_v28  ;;  %1982 = vmatprep.subr.mxu1 %v2188_v52 }
 0xbf8   :  { %1975 = vmatmul.mubr.msk.f32.vlgmr.msra.gmra.mrb[24].mxu1 %vm959_vm4, %v1468_v45 }
 0xbf9   :  { %1984 = vmatprep.mubr.msk.f32.mxu1 %vm2189_vm0, %v2188_v52 }
 0xc1b   :  { %v1632_v46 = vpop.xlane.xlu1 %1631 }
 0xc1c   :  { %2108 = vrcp.f32 %v1632_v46 }
 0xc1f   :  { %v1636_v47 = vpop.permute.xlu1 %1635 }
 0xc20   :  { %1983 = vmatpush3.msra.mxu1 %v1636_v47 }
 0xc26   :  { %v2109_v48 = vpop.eup %2108 }
 0xc27   :  { %v1634_v49 = vmul.f32 %v2109_v48, %v2103_v36 }
 0xc29   :  { %1985 = vmatmul.mubr.msk.f32.vlgmr.msra.gmra.mrb[26].mxu1 %vm959_vm4, %v1634_v49 }
 0xc54   :  { %v1208_v50 = vpop.f32.mrb[20].mxu1 }
 0xc55   :  { %v1956_v51 = vpop.f32.mrb[21].mxu1 }
 0xcc7   :  { %v1375_v53 = vpop.f32.mrb[22].mxu1 }
 0xcc8   :  { %1712 = vrot.lane.b32.xlu0 %v1375_v53, %s2184_s24  ;;  %v1966_v54 = vpop.f32.mrb[23].mxu1  ;;  %s2154_s24 = scalar_lea.vmem %s1735_s3, 128 }
 0xcc9   :  { %p2155_p2 = scmp.ne.s32.totalorder %s1735_s3, %s2154_s24  ;;  %p2160_p4 = scmp.lt.s32.totalorder %s2154_s24, %s2154_s24 }
 0xccb   :  { %v1541_v55 = vpop.f32.mrb[24].mxu1  ;;  %p2161_p5 = por %p2160_p4, %p2159_p3 }
 0xccc   :  { %1716 = vrot.lane.b32.xlu1 %v1541_v55, %s2196_s17  ;;  %v1976_v56 = vpop.f32.mrb[25].mxu1 }
 0xccd   :  { %p2162_p6 = pnand %p2161_p5, %p2155_p2 }
 0xcfc   :  { %v1707_v57 = vpop.f32.mrb[26].mxu1 }
 0xcfd   :  { %1720 = vrot.lane.b32.xlu0 %v1707_v57, %s2197_s2  ;;  %v1986_v52 = vpop.f32.mrb[27].mxu1 }
 0xd3a   :  { %v1713_v58 = vpop.permute.xlu0 %1712 }
 0xd3b   :  { %v1723_v60 = vsel %vm959_vm4, %v1208_v50, %v1713_v58 }
 0xd3e   :  { %v1717_v59 = vpop.permute.xlu1 %1716 }
 0xd3f   :  { %v1724_v61 = vsel %vm757_vm2, %v1723_v60, %v1717_v59 }
 0xd6f   :  { %v1721_v62 = vpop.permute.xlu0 %1720 }
 0xd70   :  { %v1726_v63 = vsel %vm1725_vm5, %v1724_v61, %v1721_v62 }
 0xd71   :  { %1727 = vst.msk [vmem:[#allocation8] sm:$0xff] %vm665_vm1, %v1726_v63 }
 0xd72   :  { %2165 = shalt.err (!%p2162_p6)
}
 0xd73   :  { %s2539_s6 = sld [smem:[#allocation15_spill]] }
 0xd79   :  { %s2166_s0 = scalar_lea.hbm %s2539_s6, 128 }
 0xd7a   :  { %p2167_p7 = scmp.ne.s32.totalorder %s2539_s6, %s2166_s0  ;;  %p2170_p8 = scmp.lt.u32.totalorder %s2166_s0, %s2539_s6 }
 0xd7c   :  { %p2172_p9 = pnand %p2170_p8, %p2167_p7 }
 0xd7e   :  { %2175 = shalt.err (!%p2172_p9)
}
 0xd7f   :  { %1737 = dma.vmem_to_hbm [thread:$0]  %s1735_s3, 128, %s2539_s6, [#allocation5]  }
 0xd80   :  { %2180 = dma.done.wait [#allocation5], 128  }
 0xd81   :  { %2181 = vsyncadd [#allocation5], 4294967168 }
 0xd82   :  { %1741 = vsyncpa [#allocation4], 1 }
 0xd83   :  { %1742 = vsyncpa [#allocation7], 1 }
 0xd84   :  { %1743 = vsyncpa [#allocation5], 1 }

</bundles_post_ra>
